<compile_context>
chip_gen: v5e
topology: v5e:2x2
jax: 0.10.0
libtpu: 0.0.40
codegen_flags: <defaults>
</compile_context>

<pallas_src>
import jax
import jax.numpy as jnp
from jax.experimental import pallas as pl
from jax.experimental.pallas import tpu as pltpu

VERY_NEG_NUMBER = -100000000000.0


def _base_instruction_kernel(
    hid_ref,      # (B, L, D)      query_hidden_emb
    mask_ref,     # (B, L)         query_mask (1=valid, 0=pad)
    qnode_ref,    # (B, D)         query_node_emb (squeezed)
    wq_cat_ref,   # (D, S*D)       all question_linear{i} weights, lane-concatenated
    bq_cat_ref,   # (1, S*D)       all question_linear{i} biases
    wcq_ref,      # (4, D, D)      cq_linear weight, split along its 4D input axis
    bcq_ref,      # (1, D)         cq_linear bias
    wca_ref,      # (1, D)         ca_linear weight (D -> 1)
    bca_ref,      # (1, 1) SMEM    ca_linear bias (scalar)
    out_ref,      # (S, B, LANE)   packed: [:, :, :D]=instruction, [:, :, D:D+L]=attn
):
    num_ins, B, lane = out_ref.shape
    _, L, D = hid_ref.shape

    hid = hid_ref[...]                         # (B, L, D)
    mask = mask_ref[...]                       # (B, L)
    bca = bca_ref[0, 0]                        # scalar from SMEM

    # ---------- step-invariant work, hoisted out of the carried loop ----------
    # All q_i = question_linear{i}(query_node_emb) in one MXU push (N = S*D lanes).
    q_cat = jnp.dot(qnode_ref[...], wq_cat_ref[...],
                    preferred_element_type=jnp.float32) + bq_cat_ref[...]   # (B, S*D)

    # cq = rel@W0 + q@W1 + (q-rel)@W2 + (q*rel)@W3 + b
    #    = q@(W1+W2) + rel@(W0-W2) + (q*rel)@W3 + b      (3 matmuls per step)
    w_q = wcq_ref[1] + wcq_ref[2]              # (D, D)
    w_r = wcq_ref[0] - wcq_ref[2]              # (D, D)
    w_m = wcq_ref[3]                           # (D, D)
    bcq = bcq_ref[...]                         # (1, D)

    # Fold the ca_linear weight into the hidden states once (step-invariant).
    hidw = hid * wca_ref[...][None, :, :]      # (B, L, D)

    neg_bias = (1.0 - mask) * VERY_NEG_NUMBER  # (B, L), step-invariant

    pad_w = lane - D - L
    pad = jnp.zeros((B, pad_w), jnp.float32) if pad_w > 0 else None

    rel = jnp.zeros((B, D), jnp.float32)       # init_reason: relational_ins = 0

    # ---------- fully unrolled sequential instruction steps ----------
    for s in range(num_ins):
        q_i = q_cat[:, s * D:(s + 1) * D]                                      # (B, D)

        cq = (jnp.dot(q_i, w_q, preferred_element_type=jnp.float32)
              + jnp.dot(rel, w_r, preferred_element_type=jnp.float32)
              + jnp.dot(q_i * rel, w_m, preferred_element_type=jnp.float32)
              + bcq)                                                           # (B, D)

        # ca = ca_linear(cq * query_hidden_emb): batched MXU contraction over D
        ca = jnp.einsum('bld,bkd->blk', hidw, cq[:, None, :],
                        preferred_element_type=jnp.float32)[:, :, 0] + bca     # (B, L)

        # masked softmax over the query-word axis
        logits = ca + neg_bias
        m = jnp.max(logits, axis=1, keepdims=True)
        e = jnp.exp(logits - m)
        denom = jnp.sum(e, axis=1, keepdims=True)
        r = pl.reciprocal(denom, approx=True)     # EUP vrcp (free slot)
        r = r * (2.0 - denom * r)                 # one Newton step -> ~f32 accuracy
        attn = e * r                              # (B, L)

        # relational_ins = sum_L attn * query_hidden_emb: batched MXU contraction over L
        rel = jnp.einsum('bql,bld->bqd', attn[:, None, :], hid,
                         preferred_element_type=jnp.float32)[:, 0, :]          # (B, D)

        parts = [rel, attn] if pad is None else [rel, attn, pad]
        out_ref[s] = jnp.concatenate(parts, axis=-1)   # single lane-dense store


def base_instruction_forward(hid, mask, qnode, wq_all, bq_all, wcq_split, bcq, wca, bca):
    """BaseInstruction.forward (eval mode): num_ins sequential instruction steps
    inside one pallas_call invocation.

    Returns (instructions (S, B, D), attn_list (S, B, L, 1)) matching the PyTorch
    lists stacked along step.
    """
    num_ins, D, _ = wq_all.shape
    B, L, _ = hid.shape
    lane = max(128, pl.cdiv(D + L, 128) * 128)   # lane-dense packed output width

    # Step-invariant weight packing (tiny, done once per call).
    wq_cat = jnp.transpose(wq_all, (1, 0, 2)).reshape(D, num_ins * D)   # (D, S*D)
    bq_cat = bq_all.reshape(1, num_ins * D)                              # (1, S*D)

    vmem = pl.BlockSpec(memory_space=pltpu.MemorySpace.VMEM)
    smem = pl.BlockSpec(memory_space=pltpu.MemorySpace.SMEM)

    packed = pl.pallas_call(
        _base_instruction_kernel,
        out_shape=jax.ShapeDtypeStruct((num_ins, B, lane), jnp.float32),
        in_specs=[vmem, vmem, vmem, vmem, vmem, vmem, vmem, vmem, smem],
        out_specs=vmem,
    )(hid, mask, qnode, wq_cat, bq_cat, wcq_split, bcq, wca, bca)

    instructions = packed[:, :, :D]            # (S, B, D)
    attn = packed[:, :, D:D + L]               # (S, B, L)
    return instructions, attn[..., None]       # attn_weight keeps trailing singleton dim


def reference_forward(hid, mask, qnode, wq_all, bq_all, wcq_split, bcq, wca, bca):
    """Pure-JAX reference of BaseInstruction.forward (eval mode), faithful to PyTorch
    op ordering (4 separate cq matmuls, exact divide)."""
    num_ins = wq_all.shape[0]
    B, L, D = hid.shape
    rel = jnp.zeros((B, D), jnp.float32)
    instructions, attns = [], []
    for s in range(num_ins):
        q_i = qnode @ wq_all[s] + bq_all[s, 0]
        cq = (rel @ wcq_split[0] + q_i @ wcq_split[1]
              + (q_i - rel) @ wcq_split[2] + (q_i * rel) @ wcq_split[3] + bcq[0])
        ca = jnp.sum(cq[:, None, :] * hid * wca[0][None, None, :], axis=-1) + bca[0, 0]
        logits = ca + (1.0 - mask) * VERY_NEG_NUMBER
        attn = jax.nn.softmax(logits, axis=1)
        rel = jnp.sum(attn[:, :, None] * hid, axis=1)
        instructions.append(rel)
        attns.append(attn)
    return jnp.stack(instructions), jnp.stack(attns)[..., None]


if __name__ == "__main__":
    B, L, D = 2, 8, 32          # batch, max_query_word, entity_dim
    NUM_INS = 3                 # num_step / num_ins

    key = jax.random.PRNGKey(0)
    ks = jax.random.split(key, 10)

    # "encoded question" inputs (a subclass would produce these via encode_question)
    hid = jax.random.normal(ks[0], (B, L, D), jnp.float32)            # query_hidden_emb
    qnode = jax.random.normal(ks[1], (B, D), jnp.float32)             # query_node_emb (squeezed)
    lengths = jnp.array([L, 5], jnp.int32)                            # second example padded
    mask = (jnp.arange(L)[None, :] < lengths[:, None]).astype(jnp.float32)  # query_mask

    # deterministic parameter init (shapes from the typical subclass __init__):
    #   question_linear{i}: Linear(D, D), cq_linear: Linear(4D, D), ca_linear: Linear(D, 1)
    scale = 1.0 / jnp.sqrt(jnp.float32(D))
    wq_all = jax.random.normal(ks[2], (NUM_INS, D, D), jnp.float32) * scale
    bq_all = jax.random.normal(ks[3], (NUM_INS, 1, D), jnp.float32) * 0.01
    wcq_split = jax.random.normal(ks[4], (4, D, D), jnp.float32) * (0.5 * scale)
    bcq = jax.random.normal(ks[5], (1, D), jnp.float32) * 0.01
    wca = jax.random.normal(ks[6], (1, D), jnp.float32) * scale
    bca = jax.random.normal(ks[7], (1, 1), jnp.float32) * 0.01

    run = jax.jit(base_instruction_forward)
    instructions, attn_list = run(hid, mask, qnode, wq_all, bq_all, wcq_split, bcq, wca, bca)
    jax.block_until_ready((instructions, attn_list))

    ref_ins, ref_attn = reference_forward(hid, mask, qnode, wq_all, bq_all,
                                          wcq_split, bcq, wca, bca)

    assert instructions.shape == (NUM_INS, B, D)
    assert attn_list.shape == (NUM_INS, B, L, 1)
    # Tolerance 1e-4: accounts for the algebraic re-association of the cq matmuls,
    # MXU einsum accumulation order, and the Newton-refined approximate reciprocal.
    assert jnp.allclose(instructions, ref_ins, atol=1e-4, rtol=1e-4)
    assert jnp.allclose(attn_list, ref_attn, atol=1e-4, rtol=1e-4)

    print("KERNEL_OK")
</pallas_src>

<mosaic_0001>
module attributes {stable_mosaic.version = 11 : i64} {
  func.func @_base_instruction_kernel(%arg0: memref<2x8x32xf32, #tpu.memory_space<vmem>>, %arg1: memref<2x8xf32, #tpu.memory_space<vmem>>, %arg2: memref<2x32xf32, #tpu.memory_space<vmem>>, %arg3: memref<32x96xf32, #tpu.memory_space<vmem>>, %arg4: memref<1x96xf32, #tpu.memory_space<vmem>>, %arg5: memref<4x32x32xf32, #tpu.memory_space<vmem>>, %arg6: memref<1x32xf32, #tpu.memory_space<vmem>>, %arg7: memref<1x32xf32, #tpu.memory_space<vmem>>, %arg8: memref<1x1xf32, #tpu.memory_space<smem>>, %arg9: memref<3x2x128xf32, #tpu.memory_space<vmem>>) attributes {dimension_semantics = [], scalar_prefetch = 0 : i64, scratch_operands = 0 : i64, tpu.core_type = #tpu.core_type<tc>} {
    %c0 = arith.constant 0 : index
    %c0_0 = arith.constant 0 : index
    %c0_1 = arith.constant 0 : index
    %0 = vector.load %arg0[%c0, %c0_0, %c0_1] : memref<2x8x32xf32, #tpu.memory_space<vmem>>, vector<2x8x32xf32>
    %c0_2 = arith.constant 0 : index
    %c0_3 = arith.constant 0 : index
    %1 = vector.load %arg1[%c0_2, %c0_3] : memref<2x8xf32, #tpu.memory_space<vmem>>, vector<2x8xf32>
    %c0_4 = arith.constant 0 : index
    %c0_5 = arith.constant 0 : index
    %2 = memref.load %arg8[%c0_4, %c0_5] : memref<1x1xf32, #tpu.memory_space<smem>>
    %c0_6 = arith.constant 0 : index
    %c0_7 = arith.constant 0 : index
    %3 = vector.load %arg2[%c0_6, %c0_7] : memref<2x32xf32, #tpu.memory_space<vmem>>, vector<2x32xf32>
    %c0_8 = arith.constant 0 : index
    %c0_9 = arith.constant 0 : index
    %4 = vector.load %arg3[%c0_8, %c0_9] : memref<32x96xf32, #tpu.memory_space<vmem>>, vector<32x96xf32>
    %cst = arith.constant dense<0.000000e+00> : vector<2x96xf32>
    %5 = tpu.matmul %3, %4, %cst {dimension_numbers = #tpu.dot_dimension_numbers<[1], [0], [0], [1], [0, 0, 1, 1], [], []>} : vector<2x32xf32>, vector<32x96xf32>, vector<2x96xf32> -> vector<2x96xf32>
    %c0_10 = arith.constant 0 : index
    %c0_11 = arith.constant 0 : index
    %6 = vector.load %arg4[%c0_10, %c0_11] : memref<1x96xf32, #tpu.memory_space<vmem>>, vector<1x96xf32>
    %7 = vector.broadcast %6 : vector<1x96xf32> to vector<2x96xf32>
    %8 = arith.addf %5, %7 : vector<2x96xf32>
    %c1 = arith.constant 1 : index
    %c0_12 = arith.constant 0 : index
    %c0_13 = arith.constant 0 : index
    %9 = vector.load %arg5[%c1, %c0_12, %c0_13] : memref<4x32x32xf32, #tpu.memory_space<vmem>>, vector<1x32x32xf32>
    %10 = vector.shape_cast %9 : vector<1x32x32xf32> to vector<32x32xf32>
    %c2 = arith.constant 2 : index
    %c0_14 = arith.constant 0 : index
    %c0_15 = arith.constant 0 : index
    %11 = vector.load %arg5[%c2, %c0_14, %c0_15] : memref<4x32x32xf32, #tpu.memory_space<vmem>>, vector<1x32x32xf32>
    %12 = vector.shape_cast %11 : vector<1x32x32xf32> to vector<32x32xf32>
    %13 = arith.addf %10, %12 : vector<32x32xf32>
    %c0_16 = arith.constant 0 : index
    %c0_17 = arith.constant 0 : index
    %c0_18 = arith.constant 0 : index
    %14 = vector.load %arg5[%c0_16, %c0_17, %c0_18] : memref<4x32x32xf32, #tpu.memory_space<vmem>>, vector<1x32x32xf32>
    %15 = vector.shape_cast %14 : vector<1x32x32xf32> to vector<32x32xf32>
    %c2_19 = arith.constant 2 : index
    %c0_20 = arith.constant 0 : index
    %c0_21 = arith.constant 0 : index
    %16 = vector.load %arg5[%c2_19, %c0_20, %c0_21] : memref<4x32x32xf32, #tpu.memory_space<vmem>>, vector<1x32x32xf32>
    %17 = vector.shape_cast %16 : vector<1x32x32xf32> to vector<32x32xf32>
    %18 = arith.subf %15, %17 : vector<32x32xf32>
    %c3 = arith.constant 3 : index
    %c0_22 = arith.constant 0 : index
    %c0_23 = arith.constant 0 : index
    %19 = vector.load %arg5[%c3, %c0_22, %c0_23] : memref<4x32x32xf32, #tpu.memory_space<vmem>>, vector<1x32x32xf32>
    %20 = vector.shape_cast %19 : vector<1x32x32xf32> to vector<32x32xf32>
    %c0_24 = arith.constant 0 : index
    %c0_25 = arith.constant 0 : index
    %21 = vector.load %arg6[%c0_24, %c0_25] : memref<1x32xf32, #tpu.memory_space<vmem>>, vector<1x32xf32>
    %c0_26 = arith.constant 0 : index
    %c0_27 = arith.constant 0 : index
    %22 = vector.load %arg7[%c0_26, %c0_27] : memref<1x32xf32, #tpu.memory_space<vmem>>, vector<1x32xf32>
    %23 = vector.shape_cast %22 : vector<1x32xf32> to vector<1x1x32xf32>
    %24 = vector.broadcast %23 : vector<1x1x32xf32> to vector<2x8x32xf32>
    %25 = arith.mulf %0, %24 : vector<2x8x32xf32>
    %cst_28 = arith.constant 1.000000e+00 : f32
    %26 = vector.broadcast %cst_28 : f32 to vector<2x8xf32>
    %27 = arith.subf %26, %1 : vector<2x8xf32>
    %cst_29 = arith.constant -9.99999979E+10 : f32
    %28 = vector.broadcast %cst_29 : f32 to vector<2x8xf32>
    %29 = arith.mulf %27, %28 : vector<2x8xf32>
    %cst_30 = arith.constant 0.000000e+00 : f32
    %30 = vector.broadcast %cst_30 : f32 to vector<2x88xf32>
    %cst_31 = arith.constant 0.000000e+00 : f32
    %31 = vector.broadcast %cst_31 : f32 to vector<2x32xf32>
    %32 = vector.extract_strided_slice %8 {offsets = [0, 0], sizes = [2, 32], strides = [1, 1]} : vector<2x96xf32> to vector<2x32xf32>
    %cst_32 = arith.constant dense<0.000000e+00> : vector<2x32xf32>
    %33 = tpu.matmul %32, %13, %cst_32 {dimension_numbers = #tpu.dot_dimension_numbers<[1], [0], [0], [1], [0, 0, 1, 1], [], []>} : vector<2x32xf32>, vector<32x32xf32>, vector<2x32xf32> -> vector<2x32xf32>
    %cst_33 = arith.constant dense<0.000000e+00> : vector<2x32xf32>
    %34 = tpu.matmul %31, %18, %cst_33 {dimension_numbers = #tpu.dot_dimension_numbers<[1], [0], [0], [1], [0, 0, 1, 1], [], []>} : vector<2x32xf32>, vector<32x32xf32>, vector<2x32xf32> -> vector<2x32xf32>
    %35 = arith.addf %33, %34 : vector<2x32xf32>
    %36 = arith.mulf %32, %31 : vector<2x32xf32>
    %cst_34 = arith.constant dense<0.000000e+00> : vector<2x32xf32>
    %37 = tpu.matmul %36, %20, %cst_34 {dimension_numbers = #tpu.dot_dimension_numbers<[1], [0], [0], [1], [0, 0, 1, 1], [], []>} : vector<2x32xf32>, vector<32x32xf32>, vector<2x32xf32> -> vector<2x32xf32>
    %38 = arith.addf %35, %37 : vector<2x32xf32>
    %39 = vector.broadcast %21 : vector<1x32xf32> to vector<2x32xf32>
    %40 = arith.addf %38, %39 : vector<2x32xf32>
    %41 = vector.shape_cast %40 : vector<2x32xf32> to vector<2x1x32xf32>
    "tpu.trace_start"() <{level = 10 : i32, message = "bld,bkd->blk"}> : () -> ()
    %cst_35 = arith.constant dense<0.000000e+00> : vector<2x8x1xf32>
    %42 = tpu.matmul %25, %41, %cst_35 {dimension_numbers = #tpu.dot_dimension_numbers<[2], [2], [1], [1], [0, 0, 0, 1, 1, 1], [0], [0]>} : vector<2x8x32xf32>, vector<2x1x32xf32>, vector<2x8x1xf32> -> vector<2x8x1xf32>
    "tpu.trace_stop"() : () -> ()
    %43 = vector.shape_cast %42 : vector<2x8x1xf32> to vector<2x8xf32>
    %44 = vector.broadcast %2 : f32 to vector<2x8xf32>
    %45 = arith.addf %43, %44 : vector<2x8xf32>
    %46 = arith.addf %45, %29 : vector<2x8xf32>
    %cst_36 = arith.constant dense<0xFF800000> : vector<2xf32>
    %47 = vector.multi_reduction <maximumf>, %46, %cst_36 [1] : vector<2x8xf32> to vector<2xf32>
    %48 = vector.shape_cast %47 : vector<2xf32> to vector<2x1xf32>
    %49 = vector.broadcast %48 : vector<2x1xf32> to vector<2x8xf32>
    %50 = arith.subf %46, %49 : vector<2x8xf32>
    %51 = math.exp %50 : vector<2x8xf32>
    %cst_37 = arith.constant dense<0.000000e+00> : vector<2xf32>
    %52 = vector.multi_reduction <add>, %51, %cst_37 [1] : vector<2x8xf32> to vector<2xf32>
    %53 = vector.shape_cast %52 : vector<2xf32> to vector<2x1xf32>
    %54 = tpu.reciprocal %53 {approx = true} : vector<2x1xf32> -> vector<2x1xf32>
    %55 = arith.mulf %53, %54 : vector<2x1xf32>
    %cst_38 = arith.constant 2.000000e+00 : f32
    %56 = vector.broadcast %cst_38 : f32 to vector<2x1xf32>
    %57 = arith.subf %56, %55 : vector<2x1xf32>
    %58 = arith.mulf %54, %57 : vector<2x1xf32>
    %59 = vector.broadcast %58 : vector<2x1xf32> to vector<2x8xf32>
    %60 = arith.mulf %51, %59 : vector<2x8xf32>
    %61 = vector.shape_cast %60 : vector<2x8xf32> to vector<2x1x8xf32>
    "tpu.trace_start"() <{level = 10 : i32, message = "bql,bld->bqd"}> : () -> ()
    %cst_39 = arith.constant dense<0.000000e+00> : vector<2x1x32xf32>
    %62 = tpu.matmul %61, %0, %cst_39 {dimension_numbers = #tpu.dot_dimension_numbers<[2], [1], [1], [2], [0, 0, 0, 1, 1, 2], [0], [0]>} : vector<2x1x8xf32>, vector<2x8x32xf32>, vector<2x1x32xf32> -> vector<2x1x32xf32>
    "tpu.trace_stop"() : () -> ()
    %63 = vector.shape_cast %62 : vector<2x1x32xf32> to vector<2x32xf32>
    %64 = tpu.concatenate %63, %60, %30 in 1 : vector<2x32xf32>, vector<2x8xf32>, vector<2x88xf32> -> vector<2x128xf32>
    %c0_40 = arith.constant 0 : index
    %c0_41 = arith.constant 0 : index
    %c0_42 = arith.constant 0 : index
    %65 = vector.load %arg9[%c0_40, %c0_41, %c0_42] : memref<3x2x128xf32, #tpu.memory_space<vmem>>, vector<1x2x128xf32>
    %66 = vector.shape_cast %65 : vector<1x2x128xf32> to vector<2x128xf32>
    %67 = vector.shape_cast %64 : vector<2x128xf32> to vector<1x2x128xf32>
    tpu.vector_store %arg9[%c0_40, %c0_41, %c0_42], %67 {strides = array<i32>} : memref<3x2x128xf32, #tpu.memory_space<vmem>>, vector<1x2x128xf32>,
    %68 = vector.extract_strided_slice %8 {offsets = [0, 32], sizes = [2, 32], strides = [1, 1]} : vector<2x96xf32> to vector<2x32xf32>
    %cst_43 = arith.constant dense<0.000000e+00> : vector<2x32xf32>
    %69 = tpu.matmul %68, %13, %cst_43 {dimension_numbers = #tpu.dot_dimension_numbers<[1], [0], [0], [1], [0, 0, 1, 1], [], []>} : vector<2x32xf32>, vector<32x32xf32>, vector<2x32xf32> -> vector<2x32xf32>
    %cst_44 = arith.constant dense<0.000000e+00> : vector<2x32xf32>
    %70 = tpu.matmul %63, %18, %cst_44 {dimension_numbers = #tpu.dot_dimension_numbers<[1], [0], [0], [1], [0, 0, 1, 1], [], []>} : vector<2x32xf32>, vector<32x32xf32>, vector<2x32xf32> -> vector<2x32xf32>
    %71 = arith.addf %69, %70 : vector<2x32xf32>
    %72 = arith.mulf %68, %63 : vector<2x32xf32>
    %cst_45 = arith.constant dense<0.000000e+00> : vector<2x32xf32>
    %73 = tpu.matmul %72, %20, %cst_45 {dimension_numbers = #tpu.dot_dimension_numbers<[1], [0], [0], [1], [0, 0, 1, 1], [], []>} : vector<2x32xf32>, vector<32x32xf32>, vector<2x32xf32> -> vector<2x32xf32>
    %74 = arith.addf %71, %73 : vector<2x32xf32>
    %75 = vector.broadcast %21 : vector<1x32xf32> to vector<2x32xf32>
    %76 = arith.addf %74, %75 : vector<2x32xf32>
    %77 = vector.shape_cast %76 : vector<2x32xf32> to vector<2x1x32xf32>
    "tpu.trace_start"() <{level = 10 : i32, message = "bld,bkd->blk"}> : () -> ()
    %cst_46 = arith.constant dense<0.000000e+00> : vector<2x8x1xf32>
    %78 = tpu.matmul %25, %77, %cst_46 {dimension_numbers = #tpu.dot_dimension_numbers<[2], [2], [1], [1], [0, 0, 0, 1, 1, 1], [0], [0]>} : vector<2x8x32xf32>, vector<2x1x32xf32>, vector<2x8x1xf32> -> vector<2x8x1xf32>
    "tpu.trace_stop"() : () -> ()
    %79 = vector.shape_cast %78 : vector<2x8x1xf32> to vector<2x8xf32>
    %80 = vector.broadcast %2 : f32 to vector<2x8xf32>
    %81 = arith.addf %79, %80 : vector<2x8xf32>
    %82 = arith.addf %81, %29 : vector<2x8xf32>
    %cst_47 = arith.constant dense<0xFF800000> : vector<2xf32>
    %83 = vector.multi_reduction <maximumf>, %82, %cst_47 [1] : vector<2x8xf32> to vector<2xf32>
    %84 = vector.shape_cast %83 : vector<2xf32> to vector<2x1xf32>
    %85 = vector.broadcast %84 : vector<2x1xf32> to vector<2x8xf32>
    %86 = arith.subf %82, %85 : vector<2x8xf32>
    %87 = math.exp %86 : vector<2x8xf32>
    %cst_48 = arith.constant dense<0.000000e+00> : vector<2xf32>
    %88 = vector.multi_reduction <add>, %87, %cst_48 [1] : vector<2x8xf32> to vector<2xf32>
    %89 = vector.shape_cast %88 : vector<2xf32> to vector<2x1xf32>
    %90 = tpu.reciprocal %89 {approx = true} : vector<2x1xf32> -> vector<2x1xf32>
    %91 = arith.mulf %89, %90 : vector<2x1xf32>
    %cst_49 = arith.constant 2.000000e+00 : f32
    %92 = vector.broadcast %cst_49 : f32 to vector<2x1xf32>
    %93 = arith.subf %92, %91 : vector<2x1xf32>
    %94 = arith.mulf %90, %93 : vector<2x1xf32>
    %95 = vector.broadcast %94 : vector<2x1xf32> to vector<2x8xf32>
    %96 = arith.mulf %87, %95 : vector<2x8xf32>
    %97 = vector.shape_cast %96 : vector<2x8xf32> to vector<2x1x8xf32>
    "tpu.trace_start"() <{level = 10 : i32, message = "bql,bld->bqd"}> : () -> ()
    %cst_50 = arith.constant dense<0.000000e+00> : vector<2x1x32xf32>
    %98 = tpu.matmul %97, %0, %cst_50 {dimension_numbers = #tpu.dot_dimension_numbers<[2], [1], [1], [2], [0, 0, 0, 1, 1, 2], [0], [0]>} : vector<2x1x8xf32>, vector<2x8x32xf32>, vector<2x1x32xf32> -> vector<2x1x32xf32>
    "tpu.trace_stop"() : () -> ()
    %99 = vector.shape_cast %98 : vector<2x1x32xf32> to vector<2x32xf32>
    %100 = tpu.concatenate %99, %96, %30 in 1 : vector<2x32xf32>, vector<2x8xf32>, vector<2x88xf32> -> vector<2x128xf32>
    %c1_51 = arith.constant 1 : index
    %c0_52 = arith.constant 0 : index
    %c0_53 = arith.constant 0 : index
    %101 = vector.load %arg9[%c1_51, %c0_52, %c0_53] : memref<3x2x128xf32, #tpu.memory_space<vmem>>, vector<1x2x128xf32>
    %102 = vector.shape_cast %101 : vector<1x2x128xf32> to vector<2x128xf32>
    %103 = vector.shape_cast %100 : vector<2x128xf32> to vector<1x2x128xf32>
    tpu.vector_store %arg9[%c1_51, %c0_52, %c0_53], %103 {strides = array<i32>} : memref<3x2x128xf32, #tpu.memory_space<vmem>>, vector<1x2x128xf32>,
    %104 = vector.extract_strided_slice %8 {offsets = [0, 64], sizes = [2, 32], strides = [1, 1]} : vector<2x96xf32> to vector<2x32xf32>
    %cst_54 = arith.constant dense<0.000000e+00> : vector<2x32xf32>
    %105 = tpu.matmul %104, %13, %cst_54 {dimension_numbers = #tpu.dot_dimension_numbers<[1], [0], [0], [1], [0, 0, 1, 1], [], []>} : vector<2x32xf32>, vector<32x32xf32>, vector<2x32xf32> -> vector<2x32xf32>
    %cst_55 = arith.constant dense<0.000000e+00> : vector<2x32xf32>
    %106 = tpu.matmul %99, %18, %cst_55 {dimension_numbers = #tpu.dot_dimension_numbers<[1], [0], [0], [1], [0, 0, 1, 1], [], []>} : vector<2x32xf32>, vector<32x32xf32>, vector<2x32xf32> -> vector<2x32xf32>
    %107 = arith.addf %105, %106 : vector<2x32xf32>
    %108 = arith.mulf %104, %99 : vector<2x32xf32>
    %cst_56 = arith.constant dense<0.000000e+00> : vector<2x32xf32>
    %109 = tpu.matmul %108, %20, %cst_56 {dimension_numbers = #tpu.dot_dimension_numbers<[1], [0], [0], [1], [0, 0, 1, 1], [], []>} : vector<2x32xf32>, vector<32x32xf32>, vector<2x32xf32> -> vector<2x32xf32>
    %110 = arith.addf %107, %109 : vector<2x32xf32>
    %111 = vector.broadcast %21 : vector<1x32xf32> to vector<2x32xf32>
    %112 = arith.addf %110, %111 : vector<2x32xf32>
    %113 = vector.shape_cast %112 : vector<2x32xf32> to vector<2x1x32xf32>
    "tpu.trace_start"() <{level = 10 : i32, message = "bld,bkd->blk"}> : () -> ()
    %cst_57 = arith.constant dense<0.000000e+00> : vector<2x8x1xf32>
    %114 = tpu.matmul %25, %113, %cst_57 {dimension_numbers = #tpu.dot_dimension_numbers<[2], [2], [1], [1], [0, 0, 0, 1, 1, 1], [0], [0]>} : vector<2x8x32xf32>, vector<2x1x32xf32>, vector<2x8x1xf32> -> vector<2x8x1xf32>
    "tpu.trace_stop"() : () -> ()
    %115 = vector.shape_cast %114 : vector<2x8x1xf32> to vector<2x8xf32>
    %116 = vector.broadcast %2 : f32 to vector<2x8xf32>
    %117 = arith.addf %115, %116 : vector<2x8xf32>
    %118 = arith.addf %117, %29 : vector<2x8xf32>
    %cst_58 = arith.constant dense<0xFF800000> : vector<2xf32>
    %119 = vector.multi_reduction <maximumf>, %118, %cst_58 [1] : vector<2x8xf32> to vector<2xf32>
    %120 = vector.shape_cast %119 : vector<2xf32> to vector<2x1xf32>
    %121 = vector.broadcast %120 : vector<2x1xf32> to vector<2x8xf32>
    %122 = arith.subf %118, %121 : vector<2x8xf32>
    %123 = math.exp %122 : vector<2x8xf32>
    %cst_59 = arith.constant dense<0.000000e+00> : vector<2xf32>
    %124 = vector.multi_reduction <add>, %123, %cst_59 [1] : vector<2x8xf32> to vector<2xf32>
    %125 = vector.shape_cast %124 : vector<2xf32> to vector<2x1xf32>
    %126 = tpu.reciprocal %125 {approx = true} : vector<2x1xf32> -> vector<2x1xf32>
    %127 = arith.mulf %125, %126 : vector<2x1xf32>
    %cst_60 = arith.constant 2.000000e+00 : f32
    %128 = vector.broadcast %cst_60 : f32 to vector<2x1xf32>
    %129 = arith.subf %128, %127 : vector<2x1xf32>
    %130 = arith.mulf %126, %129 : vector<2x1xf32>
    %131 = vector.broadcast %130 : vector<2x1xf32> to vector<2x8xf32>
    %132 = arith.mulf %123, %131 : vector<2x8xf32>
    %133 = vector.shape_cast %132 : vector<2x8xf32> to vector<2x1x8xf32>
    "tpu.trace_start"() <{level = 10 : i32, message = "bql,bld->bqd"}> : () -> ()
    %cst_61 = arith.constant dense<0.000000e+00> : vector<2x1x32xf32>
    %134 = tpu.matmul %133, %0, %cst_61 {dimension_numbers = #tpu.dot_dimension_numbers<[2], [1], [1], [2], [0, 0, 0, 1, 1, 2], [0], [0]>} : vector<2x1x8xf32>, vector<2x8x32xf32>, vector<2x1x32xf32> -> vector<2x1x32xf32>
    "tpu.trace_stop"() : () -> ()
    %135 = vector.shape_cast %134 : vector<2x1x32xf32> to vector<2x32xf32>
    %136 = tpu.concatenate %135, %132, %30 in 1 : vector<2x32xf32>, vector<2x8xf32>, vector<2x88xf32> -> vector<2x128xf32>
    %c2_62 = arith.constant 2 : index
    %c0_63 = arith.constant 0 : index
    %c0_64 = arith.constant 0 : index
    %137 = vector.load %arg9[%c2_62, %c0_63, %c0_64] : memref<3x2x128xf32, #tpu.memory_space<vmem>>, vector<1x2x128xf32>
    %138 = vector.shape_cast %137 : vector<1x2x128xf32> to vector<2x128xf32>
    %139 = vector.shape_cast %136 : vector<2x128xf32> to vector<1x2x128xf32>
    tpu.vector_store %arg9[%c2_62, %c0_63, %c0_64], %139 {strides = array<i32>} : memref<3x2x128xf32, #tpu.memory_space<vmem>>, vector<1x2x128xf32>,
    return
  }
}

</mosaic_0001>

<bundles_post_ra>
// kernel: base_instruction_forward.1
= control target key start
LH: loop header
LB: loop body
LE: loop exit
PB: predicated region body
PF: predicated region fallthrough
CT: control target
= control target key end

     0   :  { %vm46_vm0 = vcmask 261120   ;;  %v200_v28 = vlaneseq  ;;  %v833_v31 = vmov 0.0   ;;  %v834_v60 = vmov 0   ;;  %s836_s13 = smov 32   ;;  %s837_s16 = smov 64   ;;  %s1152_s3 = inlined_call_operand.vmem [shape: f32[32,96], index: 3, kind: input, shape index: {}]   ;;  %s1153_s5 = inlined_call_operand.vmem [shape: f32[4,32,32], index: 5, kind: input, shape index: {}]   ;;  %s1154_s2 = inlined_call_operand.vmem [shape: f32[2,32], index: 2, kind: input, shape index: {}]   ;;  %s1155_s4 = inlined_call_operand.vmem [shape: f32[1,96], index: 4, kind: input, shape index: {}]   ;;  %s1156_s6 = inlined_call_operand.vmem [shape: f32[1,32], index: 6, kind: input, shape index: {}]   ;;  %s1157_s7 = inlined_call_operand.vmem [shape: f32[1,32], index: 7, kind: input, shape index: {}]   ;;  %s1158_s1 = inlined_call_operand.vmem [shape: f32[2,8], index: 1, kind: input, shape index: {}]   ;;  %s1159_s0 = inlined_call_operand.vmem [shape: f32[2,8,32], index: 0, kind: input, shape index: {}]   ;;  %s1160_s8 = inlined_call_operand.<no memory space> [shape: f32[1,1], index: 8, kind: input, shape index: {}]   ;;  %s1161_s9 = inlined_call_operand.vmem [shape: f32[3,2,128], index: 9, kind: output, shape index: {}]  }
   0x1   :  { %v41_v0 = vld [vmem:[%s1152_s3 + $0x18] sm:$0xff]  ;;  %v40_v1 = vld [vmem:[%s1152_s3 + $0x10] sm:$0xff]  ;;  %v39_v2 = vld [vmem:[%s1152_s3 + $0x8] sm:$0xff]  ;;  %809 = vset.pattern.permute.xlu2 %v834_v60  ;;  %811 = vset.pattern.permute.xlu0 %v834_v60  ;;  %v1033_v61 = vstv %s1160_s8  ;;  %vm229_vm1 = vcmask 1041409   ;;  %vm232_vm2 = vcmask 58368   ;;  %s835_s8 = smov 96  }
   0x2   :  { %62 = vmatpush.msra.mxu0 %v41_v0  ;;  %v778_v3 = vld [vmem:[%s1153_s5 + $0x38] sm:$0xff]  ;;  %v777_v5 = vld [vmem:[%s1153_s5 + $0x30] sm:$0xff]  ;;  %v38_v10 = vld [vmem:[%s1152_s3] sm:$0xff]  ;;  %v201_v30 = vshrl.u32 %v200_v28, 7  ;;  %vm278_vm3 = vcmask 64512   ;;  %vm339_vm4 = vcmask 326656  }
   0x3   :  { %v782_v4 = vld [vmem:[%s1153_s5 + $0x58] sm:$0xff]  ;;  %v781_v6 = vld [vmem:[%s1153_s5 + $0x50] sm:$0xff]  ;;  %v37_v11 = vld [vmem:[%s1154_s2] sm:$0x3] }
   0x4   :  { %63 = vmatpush.msra.mxu0 %v40_v1  ;;  %v909_v7 = vadd.f32 %v782_v4, %v778_v3  ;;  %v911_v8 = vadd.f32 %v781_v6, %v777_v5  ;;  %v916_v9 = vld [vmem:[%s1153_s5 + $0x78] sm:$0xff]  ;;  %v776_v12 = vld [vmem:[%s1153_s5 + $0x28] sm:$0xff]  ;;  %v939_v15 = vld [vmem:[%s1153_s5 + $0x70] sm:$0xff]  ;;  %808 = vset.pattern.permute.xlu1 %v201_v30 }
   0x5   :  { %168 = vmatpush.msra.mxu3 %v916_v9  ;;  %v780_v13 = vld [vmem:[%s1153_s5 + $0x48] sm:$0xff]  ;;  %v87_v16 = vld [vmem:[%s1153_s5 + $0x18] sm:$0xff]  ;;  %v775_v17 = vld [vmem:[%s1153_s5 + $0x20] sm:$0xff] }
   0x6   :  { %64 = vmatpush.msra.mxu0 %v39_v2  ;;  %144 = vmatpush.msra.mxu2 %v909_v7  ;;  %v934_v14 = vadd.f32 %v780_v13, %v776_v12  ;;  %v91_v18 = vsub.f32 %v87_v16, %v782_v4  ;;  %v779_v19 = vld [vmem:[%s1153_s5 + $0x40] sm:$0xff]  ;;  %v957_v21 = vld [vmem:[%s1153_s5 + $0x68] sm:$0xff]  ;;  %v86_v22 = vld [vmem:[%s1153_s5 + $0x10] sm:$0xff] }
   0x7   :  { %169 = vmatpush.msra.mxu3 %v939_v15  ;;  %v952_v20 = vadd.f32 %v779_v19, %v775_v17  ;;  %v90_v23 = vsub.f32 %v86_v22, %v781_v6  ;;  %v967_v24 = vld [vmem:[%s1153_s5 + $0x60] sm:$0xff]  ;;  %v85_v25 = vld [vmem:[%s1153_s5 + $0x8] sm:$0xff] }
   0x8   :  { %65 = vmatpush.msra.mxu0 %v38_v10  ;;  %145 = vmatpush.msra.mxu2 %v911_v8  ;;  %v89_v26 = vsub.f32 %v85_v25, %v780_v13  ;;  %v84_v27 = vld [vmem:[%s1153_s5] sm:$0xff]  ;;  %v1002_v41 = vld [vmem:[%s1159_s0 + $0x8] sm:$0xff]  ;;  %v1044_v10 = vand.u32 127, %v200_v28 }
   0x9   :  { %774 = vmatmul.msk.f32.vlgmr.msra.gmra.mxu0 %vm46_vm0, %v37_v11  ;;  %121 = vmatpush.msra.mxu1 %v91_v18  ;;  %v88_v29 = vsub.f32 %v84_v27, %v779_v19  ;;  %v812_v32 = vld [vmem:[%s1155_s4] ss:$0 sm:$0xff] }
   0xa   :  { %146 = vmatpush.msra.mxu2 %v934_v14  ;;  %170 = vmatpush.msra.mxu3 %v957_v21  ;;  %v35_v36 = vld [vmem:[%s1158_s1] sm:$0x3] }
   0xb   :  { %122 = vmatpush.msra.mxu1 %v90_v23  ;;  %v104_v37 = vsub.f32 1.0, %v35_v36  ;;  %v996_v40 = vld [vmem:[%s1159_s0] sm:$0xff] }
   0xc   :  { %147 = vmatpush.msra.mxu2 %v952_v20  ;;  %171 = vmatpush.msra.mxu3 %v967_v24  ;;  %v1014_v46 = vld [vmem:[%s1156_s6] ss:$0 sm:$0xff] }
   0xd   :  { %123 = vmatpush.msra.mxu1 %v89_v26  ;;  %v105_v38 = vmul.f32 -1e+11, %v104_v37  ;;  %296 = vmatpush.msrb.mxu0 %v996_v40  ;;  %v814_v47 = vld [vmem:[%s1157_s7] ss:$0 sm:$0xff] }
   0xe   :  { %380 = vmatpush.msrb.mxu3 %v909_v7  ;;  %356 = vmatpush.msrb.mxu2 %v91_v18  ;;  %v1021_v51 = vmul.f32 %v814_v47, %v996_v40  ;;  %v1026_v56 = vmul.f32 %v814_v47, %v1002_v41 }
   0xf   :  { %124 = vmatpush.msra.mxu1 %v88_v29  ;;  %v199_v39 = vperm.slane %v105_v38, 0  ;;  %409 = vmatpush.msra.mxu0 %v916_v9  ;;  %v206_v42 = vperm.slane %v105_v38, 1 }
  0x10   :  { %381 = vmatpush.msrb.mxu3 %v911_v8  ;;  %357 = vmatpush.msrb.mxu2 %v90_v23 }
  0x11   :  { %125 = vmatmul.f32.vlgmr.msra.gmra.mxu1 %v833_v31  ;;  %204 = vperm.xlu1 %808, %v199_v39  }
  0x12   :  { %382 = vmatpush.msrb.mxu3 %v934_v14  ;;  %358 = vmatpush.msrb.mxu2 %v89_v26 }
  0x13   :  { %323 = vmatpush.msrb.mxu1 %v1002_v41  ;;  %410 = vmatpush.msra.mxu0 %v939_v15 }
  0x14   :  { %383 = vmatpush.msrb.mxu3 %v952_v20  ;;  %359 = vmatpush.msrb.mxu2 %v88_v29 }
  0x15   :  { %511 = vmatpush.msra.mxu1 %v996_v40  ;;  %411 = vmatpush.msra.mxu0 %v957_v21 }
  0x17   :  { %412 = vmatpush.msra.mxu0 %v967_v24 }
  0x19   :  { %211 = vperm.xlu1 %808, %v206_v42  }
  0x21   :  { %810 = vset.pattern.permute.xlu1 %v834_v60 }
  0x83   :  { %v1035_v62 = vpop.permute.xlu1 %204 }
  0x86   :  { %v67_v33 = vpop.f32.mrf.mxu0 }
  0x87   :  { %v984_v34 = vadd.f32 %v812_v32, %v67_v33 }
  0x89   :  { %787 = vmatmul.msk.f32.vlgmr.msra.gmra.mxu2 %vm46_vm0, %v984_v34  ;;  %v152_v35 = vmul.f32 0.0, %v984_v34 }
  0x8a   :  { %538 = vmatpush.msra.mxu2 %v1002_v41 }
  0x8b   :  { %788 = vmatmul.msk.f32.vlgmr.msra.gmra.mxu3 %vm46_vm0, %v152_v35  ;;  %v1040_v4 = vpop.permute.xlu1 %211 }
  0x8c   :  { %570 = vmatpush.msra.mxu3 %v91_v18 }
  0x8e   :  { %571 = vmatpush.msra.mxu3 %v90_v23  ;;  %v126_v43 = vpop.f32.mrf.mxu1 }
  0x90   :  { %572 = vmatpush.msra.mxu3 %v89_v26 }
  0x92   :  { %573 = vmatpush.msra.mxu3 %v88_v29 }
 0x10c   :  { %v149_v44 = vpop.f32.mrf.mxu2 }
 0x10d   :  { %v150_v45 = vadd.f32 %v149_v44, %v126_v43 }
 0x10e   :  { %v173_v48 = vpop.f32.mrf.mxu3 }
 0x10f   :  { %v176_v49 = vadd.f32 %v173_v48, %v150_v45 }
 0x111   :  { %v180_v50 = vadd.f32 %v1014_v46, %v176_v49 }
 0x113   :  { %v182_v52 = vrot.slane %v180_v50, 1  ;;  %v183_v53 = vperm.slane %v180_v50, 0 }
 0x115   :  { %v185_v54 = vmul.f32 %v183_v53, %v1021_v51  ;;  %v189_v57 = vperm.slane %v182_v52, 0 }
 0x117   :  { %v186_v55 = vsel %vm46_vm0, %v185_v54, 0.0  ;;  %v191_v58 = vmul.f32 %v189_v57, %v1026_v56 }
 0x118   :  { %187 = vadd.xlane.f32.xlu0 %v186_v55 }
 0x119   :  { %v192_v59 = vsel %vm46_vm0, %v191_v58, 0.0 }
 0x120   :  { %193 = vadd.xlane.f32.xlu0 %v192_v59 }
 0x18b   :  { %v188_v63 = vpop.xlane.xlu0 %187 }
 0x18c   :  { %v196_v0 = vadd.f32 %v1033_v61, %v188_v63 }
 0x18e   :  { %v215_v1 = vadd.f32 %v1035_v62, %v196_v0 }
 0x190   :  { %220 = vperm.xlu2 %809, %v215_v1  }
 0x193   :  { %v194_v2 = vpop.xlane.xlu0 %193 }
 0x194   :  { %v197_v3 = vadd.f32 %v1033_v61, %v194_v2 }
 0x196   :  { %v216_v5 = vadd.f32 %v1040_v4, %v197_v3 }
 0x198   :  { %223 = vperm.xlu2 %809, %v216_v5  }
 0x1ea   :  { %v221_v6 = vpop.permute.xlu2 %220 }
 0x1eb   :  { %v227_v12 = vperm.slane %v221_v6, %v1044_v10 }
 0x1f2   :  { %v224_v11 = vpop.permute.xlu2 %223 }
 0x1f3   :  { %v228_v13 = vperm.slane %v224_v11, %v1044_v10 }
 0x1f5   :  { %v230_v16 = vsel %vm229_vm1, %v228_v13, %v227_v12 }
 0x1f6   :  { %v233_v17 = vsel %vm232_vm2, %v230_v16, -inf }
 0x1f7   :  { %234 = vmax.xlane.f32.xlu0 %v233_v17 }
 0x26a   :  { %v235_v18 = vpop.xlane.xlu0 %234 }
 0x26b   :  { %v237_v19 = vperm.slane %v235_v18, 0  ;;  %v238_v22 = vperm.slane %v235_v18, 1 }
 0x26d   :  { %v241_v23 = vsub.f32 %v215_v1, %v237_v19  ;;  %v242_v25 = vsub.f32 %v216_v5, %v238_v22 }
 0x26f   :  { %v243_v26 = vmul.f32 1.442695, %v241_v23  ;;  %v245_v27 = vmul.f32 1.442695, %v242_v25 }
 0x271   :  { %815 = vpow2.f32 %v243_v26 }
 0x272   :  { %817 = vpow2.f32 %v245_v27 }
 0x277   :  { %v816_v28 = vpop.eup %815 }
 0x278   :  { %v818_v29 = vpop.eup %817  ;;  %250 = vperm.xlu1 %810, %v816_v28  }
 0x279   :  { %253 = vperm.xlu2 %809, %v818_v29  }
 0x2d3   :  { %v254_v30 = vpop.permute.xlu2 %253 }
 0x2d4   :  { %v256_v32 = vperm.slane %v254_v30, %v1044_v10 }
 0x2ea   :  { %v251_v31 = vpop.permute.xlu1 %250 }
 0x2eb   :  { %v255_v33 = vperm.slane %v251_v31, %v1044_v10 }
 0x2ed   :  { %v257_v35 = vsel %vm229_vm1, %v256_v32, %v255_v33 }
 0x2ee   :  { %v259_v36 = vsel %vm232_vm2, %v257_v35, 0.0 }
 0x2ef   :  { %260 = vadd.xlane.f32.xlu0 %v259_v36 }
 0x362   :  { %v261_v37 = vpop.xlane.xlu0 %260 }
 0x363   :  { %819 = vrcp.f32 %v261_v37 }
 0x369   :  { %v820_v38 = vpop.eup %819 }
 0x36a   :  { %v263_v39 = vmul.f32 %v820_v38, %v261_v37 }
 0x36c   :  { %v264_v42 = vsub.f32 2.0, %v263_v39 }
 0x36e   :  { %v265_v43 = vmul.f32 %v820_v38, %v264_v42 }
 0x370   :  { %v268_v44 = vperm.slane %v265_v43, 1  ;;  %v267_v45 = vperm.slane %v265_v43, 0 }
 0x372   :  { %v272_v47 = vmul.f32 %v818_v29, %v268_v44  ;;  %v271_v48 = vmul.f32 %v816_v28, %v267_v45 }
 0x374   :  { %303 = vperm.xlu1 %810, %v272_v47   ;;  %275 = vperm.xlu2 %809, %v271_v48  }
 0x37c   :  { %364 = vrot.lane.b32.xlu1 %v984_v34, %s835_s8 }
 0x3ce   :  { %v276_v49 = vpop.permute.xlu2 %275 }
 0x3cf   :  { %v277_v50 = vperm.slane %v276_v49, %v1044_v10 }
 0x3d1   :  { %789 = vmatmul.msk.f32.vlgmr.msrb.gmra.mxu0 %vm278_vm3, %v277_v50 }
 0x3d2   :  { %594 = vmatpush.msrb.mxu0 %v909_v7  ;;  %v1071_v7 = vadd.s32 4294967264, %v1044_v10 }
 0x3d4   :  { %595 = vmatpush.msrb.mxu0 %v911_v8 }
 0x3d6   :  { %596 = vmatpush.msrb.mxu0 %v934_v14 }
 0x3d8   :  { %597 = vmatpush.msrb.mxu0 %v952_v20  ;;  %v334_v20 = vperm.slane %v276_v49, %v1071_v7 }
 0x3e6   :  { %v304_v52 = vpop.permute.xlu1 %303 }
 0x3e7   :  { %v305_v53 = vperm.slane %v304_v52, %v1044_v10  ;;  %v335_v8 = vperm.slane %v304_v52, %v1071_v7 }
 0x3e9   :  { %790 = vmatmul.msk.f32.vlgmr.msrb.gmra.mxu1 %vm278_vm3, %v305_v53 }
 0x3ea   :  { %623 = vmatpush.msrb.mxu1 %v916_v9 }
 0x3ec   :  { %624 = vmatpush.msrb.mxu1 %v939_v15 }
 0x3ee   :  { %v365_v54 = vpop.permute.xlu1 %364  ;;  %625 = vmatpush.msrb.mxu1 %v957_v21  ;;  %v336_v21 = vsel %vm229_vm1, %v335_v8, %v334_v20 }
 0x3ef   :  { %792 = vmatmul.msk.f32.vlgmr.msrb.gmra.mxu3 %vm46_vm0, %v365_v54 }
 0x3f0   :  { %626 = vmatpush.msrb.mxu1 %v967_v24  ;;  %752 = vmatpush.msrb.mxu3 %v1002_v41 }
 0x44e   :  { %v298_v55 = vpop.f32.mrf.mxu0 }
 0x466   :  { %v325_v14 = vpop.f32.mrf.mxu1 }
 0x467   :  { %v330_v9 = vrot.slane %v325_v14, 7 }
 0x469   :  { %v331_v15 = vsel %vm229_vm1, %v330_v9, %v298_v55 }
 0x46a   :  { %388 = vrot.lane.b32.xlu0 %v331_v15, %s836_s13  ;;  %v338_v24 = vsel %vm46_vm0, %v331_v15, %v336_v21  ;;  %791 = vmatmul.msk.f32.vlgmr.msrb.gmra.mxu2 %vm46_vm0, %v331_v15 }
 0x46b   :  { %v340_v41 = vsel %vm339_vm4, %v338_v24, 0.0  ;;  %725 = vmatpush.msrb.mxu2 %v996_v40 }
 0x46c   :  { %341 = vst [vmem:[%s1161_s9] sm:$0x3] %v340_v41 }
 0x472   :  { %v385_v63 = vpop.f32.mrf.mxu3 }
 0x4dc   :  { %v389_v57 = vpop.permute.xlu0 %388 }
 0x4dd   :  { %v391_v58 = vmul.f32 %v389_v57, %v984_v34 }
 0x4df   :  { %393 = vrot.lane.b32.xlu2 %v391_v58, %s835_s8 }
 0x4ed   :  { %v361_v60 = vpop.f32.mrf.mxu2 }
 0x4ee   :  { %v386_v0 = vadd.f32 %v385_v63, %v361_v60 }
 0x539   :  { %v394_v59 = vpop.permute.xlu2 %393 }
 0x53a   :  { %793 = vmatmul.msk.f32.vlgmr.msra.gmra.mxu0 %vm46_vm0, %v394_v59 }
 0x5b7   :  { %v414_v1 = vpop.f32.mrf.mxu0 }
 0x5b8   :  { %v417_v2 = vadd.f32 %v414_v1, %v386_v0 }
 0x5ba   :  { %v418_v3 = vadd.f32 %v1014_v46, %v417_v2 }
 0x5bc   :  { %v420_v40 = vrot.slane %v418_v3, 1  ;;  %v421_v5 = vperm.slane %v418_v3, 0 }
 0x5be   :  { %v423_v6 = vmul.f32 %v421_v5, %v1021_v51  ;;  %v427_v11 = vperm.slane %v420_v40, 0 }
 0x5c0   :  { %v424_v12 = vsel %vm46_vm0, %v423_v6, 0.0  ;;  %v429_v13 = vmul.f32 %v427_v11, %v1026_v56 }
 0x5c1   :  { %425 = vadd.xlane.f32.xlu1 %v424_v12 }
 0x5c2   :  { %v430_v16 = vsel %vm46_vm0, %v429_v13, 0.0 }
 0x5c3   :  { %431 = vadd.xlane.f32.xlu2 %v430_v16 }
 0x634   :  { %v426_v17 = vpop.xlane.xlu1 %425 }
 0x635   :  { %v433_v18 = vadd.f32 %v426_v17, %v1033_v61 }
 0x636   :  { %v432_v22 = vpop.xlane.xlu2 %431 }
 0x637   :  { %v435_v19 = vadd.f32 %v433_v18, %v1035_v62  ;;  %v434_v23 = vadd.f32 %v432_v22, %v1033_v61 }
 0x639   :  { %440 = vperm.xlu0 %811, %v435_v19   ;;  %v436_v25 = vadd.f32 %v434_v23, %v1040_v4 }
 0x641   :  { %443 = vperm.xlu0 %811, %v436_v25  }
 0x6ab   :  { %v441_v26 = vpop.permute.xlu0 %440 }
 0x6ac   :  { %v445_v28 = vperm.slane %v441_v26, %v1044_v10 }
 0x6b3   :  { %v444_v27 = vpop.permute.xlu0 %443 }
 0x6b4   :  { %v446_v29 = vperm.slane %v444_v27, %v1044_v10 }
 0x6b6   :  { %v447_v30 = vsel %vm229_vm1, %v446_v29, %v445_v28 }
 0x6b7   :  { %v449_v31 = vsel %vm232_vm2, %v447_v30, -inf }
 0x6b8   :  { %450 = vmax.xlane.f32.xlu0 %v449_v31 }
 0x72b   :  { %v451_v32 = vpop.xlane.xlu0 %450 }
 0x72c   :  { %v453_v33 = vperm.slane %v451_v32, 0  ;;  %v454_v35 = vperm.slane %v451_v32, 1 }
 0x72e   :  { %v457_v36 = vsub.f32 %v435_v19, %v453_v33  ;;  %v458_v37 = vsub.f32 %v436_v25, %v454_v35 }
 0x730   :  { %v459_v38 = vmul.f32 1.442695, %v457_v36  ;;  %v461_v39 = vmul.f32 1.442695, %v458_v37 }
 0x732   :  { %821 = vpow2.f32 %v459_v38 }
 0x733   :  { %823 = vpow2.f32 %v461_v39 }
 0x738   :  { %v822_v42 = vpop.eup %821 }
 0x739   :  { %v824_v43 = vpop.eup %823  ;;  %466 = vperm.xlu2 %809, %v822_v42  }
 0x73a   :  { %469 = vperm.xlu1 %810, %v824_v43  }
 0x793   :  { %v467_v44 = vpop.permute.xlu2 %466 }
 0x794   :  { %v471_v47 = vperm.slane %v467_v44, %v1044_v10 }
 0x7ac   :  { %v470_v45 = vpop.permute.xlu1 %469 }
 0x7ad   :  { %v472_v48 = vperm.slane %v470_v45, %v1044_v10 }
 0x7af   :  { %v473_v49 = vsel %vm229_vm1, %v472_v48, %v471_v47 }
 0x7b0   :  { %v475_v50 = vsel %vm232_vm2, %v473_v49, 0.0 }
 0x7b1   :  { %476 = vadd.xlane.f32.xlu2 %v475_v50 }
 0x824   :  { %v477_v52 = vpop.xlane.xlu2 %476 }
 0x825   :  { %825 = vrcp.f32 %v477_v52 }
 0x82b   :  { %v826_v53 = vpop.eup %825 }
 0x82c   :  { %v479_v54 = vmul.f32 %v826_v53, %v477_v52 }
 0x82e   :  { %v480_v8 = vsub.f32 2.0, %v479_v54 }
 0x830   :  { %v481_v14 = vmul.f32 %v826_v53, %v480_v8 }
 0x832   :  { %v484_v20 = vperm.slane %v481_v14, 1  ;;  %v483_v55 = vperm.slane %v481_v14, 0 }
 0x834   :  { %v488_v9 = vmul.f32 %v824_v43, %v484_v20  ;;  %v487_v15 = vmul.f32 %v822_v42, %v483_v55 }
 0x836   :  { %518 = vperm.xlu1 %810, %v488_v9  }
 0x83e   :  { %491 = vperm.xlu1 %810, %v487_v15  }
 0x846   :  { %578 = vrot.lane.b32.xlu1 %v984_v34, %s837_s16 }
 0x8a8   :  { %v519_v21 = vpop.permute.xlu1 %518 }
 0x8a9   :  { %v520_v24 = vperm.slane %v519_v21, %v1044_v10  ;;  %v549_v57 = vperm.slane %v519_v21, %v1071_v7 }
 0x8ab   :  { %795 = vmatmul.msk.f32.vlgmr.msra.gmra.mxu2 %vm278_vm3, %v520_v24 }
 0x8b0   :  { %v492_v41 = vpop.permute.xlu1 %491 }
 0x8b1   :  { %v493_v58 = vperm.slane %v492_v41, %v1044_v10  ;;  %v548_v59 = vperm.slane %v492_v41, %v1071_v7 }
 0x8b3   :  { %794 = vmatmul.msk.f32.vlgmr.msra.gmra.mxu1 %vm278_vm3, %v493_v58  ;;  %v550_v60 = vsel %vm229_vm1, %v549_v57, %v548_v59 }
 0x8b8   :  { %v579_v63 = vpop.permute.xlu1 %578 }
 0x8b9   :  { %798 = vmatmul.msk.f32.vlgmr.msrb.gmra.mxu0 %vm46_vm0, %v579_v63 }
 0x92e   :  { %v540_v0 = vpop.f32.mrf.mxu2 }
 0x92f   :  { %v545_v1 = vrot.slane %v540_v0, 7 }
 0x930   :  { %v513_v2 = vpop.f32.mrf.mxu1 }
 0x931   :  { %v546_v3 = vsel %vm229_vm1, %v545_v1, %v513_v2 }
 0x932   :  { %602 = vrot.lane.b32.xlu0 %v546_v3, %s837_s16  ;;  %v552_v40 = vsel %vm46_vm0, %v546_v3, %v550_v60  ;;  %797 = vmatmul.msk.f32.vlgmr.msra.gmra.mxu3 %vm46_vm0, %v546_v3 }
 0x933   :  { %v553_v5 = vsel %vm339_vm4, %v552_v40, 0.0 }
 0x934   :  { %796 = vst [vmem:[%s1161_s9 + $0x2] sm:$0x3] %v553_v5 }
 0x936   :  { %v599_v16 = vpop.f32.mrf.mxu0 }
 0x9a4   :  { %v603_v6 = vpop.permute.xlu0 %602 }
 0x9a5   :  { %v605_v11 = vmul.f32 %v603_v6, %v984_v34 }
 0x9a7   :  { %607 = vrot.lane.b32.xlu1 %v605_v11, %s837_s16 }
 0x9b5   :  { %v575_v13 = vpop.f32.mrf.mxu3 }
 0x9b6   :  { %v600_v17 = vadd.f32 %v599_v16, %v575_v13 }
 0xa19   :  { %v608_v12 = vpop.permute.xlu1 %607 }
 0xa1a   :  { %799 = vmatmul.msk.f32.vlgmr.msrb.gmra.mxu1 %vm46_vm0, %v608_v12 }
 0xa97   :  { %v628_v18 = vpop.f32.mrf.mxu1 }
 0xa98   :  { %v631_v19 = vadd.f32 %v628_v18, %v600_v17 }
 0xa9a   :  { %v632_v22 = vadd.f32 %v1014_v46, %v631_v19 }
 0xa9c   :  { %v634_v23 = vrot.slane %v632_v22, 1  ;;  %v635_v25 = vperm.slane %v632_v22, 0 }
 0xa9e   :  { %v637_v26 = vmul.f32 %v635_v25, %v1021_v51  ;;  %v641_v27 = vperm.slane %v634_v23, 0 }
 0xaa0   :  { %v638_v28 = vsel %vm46_vm0, %v637_v26, 0.0  ;;  %v643_v34 = vmul.f32 %v641_v27, %v1026_v56 }
 0xaa1   :  { %639 = vadd.xlane.f32.xlu0 %v638_v28 }
 0xaa2   :  { %v644_v29 = vsel %vm46_vm0, %v643_v34, 0.0 }
 0xaa3   :  { %645 = vadd.xlane.f32.xlu1 %v644_v29 }
 0xb14   :  { %v640_v30 = vpop.xlane.xlu0 %639 }
 0xb15   :  { %v647_v31 = vadd.f32 %v640_v30, %v1033_v61 }
 0xb16   :  { %v646_v33 = vpop.xlane.xlu1 %645 }
 0xb17   :  { %v649_v32 = vadd.f32 %v647_v31, %v1035_v62  ;;  %v648_v46 = vadd.f32 %v646_v33, %v1033_v61 }
 0xb19   :  { %654 = vperm.xlu2 %809, %v649_v32   ;;  %v650_v51 = vadd.f32 %v648_v46, %v1040_v4 }
 0xb21   :  { %657 = vperm.xlu2 %809, %v650_v51  }
 0xb73   :  { %v655_v35 = vpop.permute.xlu2 %654 }
 0xb74   :  { %v659_v56 = vperm.slane %v655_v35, %v1044_v10 }
 0xb7b   :  { %v658_v36 = vpop.permute.xlu2 %657 }
 0xb7c   :  { %v660_v37 = vperm.slane %v658_v36, %v1044_v10 }
 0xb7e   :  { %v661_v38 = vsel %vm229_vm1, %v660_v37, %v659_v56 }
 0xb7f   :  { %v663_v39 = vsel %vm232_vm2, %v661_v38, -inf }
 0xb80   :  { %664 = vmax.xlane.f32.xlu2 %v663_v39 }
 0xbf3   :  { %v665_v42 = vpop.xlane.xlu2 %664 }
 0xbf4   :  { %v667_v62 = vperm.slane %v665_v42, 0  ;;  %v668_v43 = vperm.slane %v665_v42, 1 }
 0xbf6   :  { %v671_v44 = vsub.f32 %v649_v32, %v667_v62  ;;  %v672_v45 = vsub.f32 %v650_v51, %v668_v43 }
 0xbf8   :  { %v673_v61 = vmul.f32 1.442695, %v671_v44  ;;  %v675_v47 = vmul.f32 1.442695, %v672_v45 }
 0xbfa   :  { %827 = vpow2.f32 %v673_v61 }
 0xbfb   :  { %829 = vpow2.f32 %v675_v47 }
 0xc00   :  { %v828_v4 = vpop.eup %827 }
 0xc01   :  { %v830_v48 = vpop.eup %829  ;;  %680 = vperm.xlu0 %811, %v828_v4  }
 0xc02   :  { %683 = vperm.xlu1 %810, %v830_v48  }
 0xc73   :  { %v681_v49 = vpop.permute.xlu0 %680 }
 0xc74   :  { %v684_v50 = vpop.permute.xlu1 %683  ;;  %v685_v52 = vperm.slane %v681_v49, %v1044_v10 }
 0xc75   :  { %v686_v53 = vperm.slane %v684_v50, %v1044_v10 }
 0xc77   :  { %v687_v54 = vsel %vm229_vm1, %v686_v53, %v685_v52 }
 0xc78   :  { %v689_v8 = vsel %vm232_vm2, %v687_v54, 0.0 }
 0xc79   :  { %690 = vadd.xlane.f32.xlu0 %v689_v8 }
 0xcec   :  { %v691_v14 = vpop.xlane.xlu0 %690 }
 0xced   :  { %831 = vrcp.f32 %v691_v14 }
 0xcf3   :  { %v832_v20 = vpop.eup %831 }
 0xcf4   :  { %v693_v9 = vmul.f32 %v832_v20, %v691_v14 }
 0xcf6   :  { %v694_v55 = vsub.f32 2.0, %v693_v9 }
 0xcf8   :  { %v695_v15 = vmul.f32 %v832_v20, %v694_v55 }
 0xcfa   :  { %v698_v21 = vperm.slane %v695_v15, 1  ;;  %v697_v41 = vperm.slane %v695_v15, 0 }
 0xcfc   :  { %v702_v24 = vmul.f32 %v830_v48, %v698_v21  ;;  %v701_v57 = vmul.f32 %v828_v4, %v697_v41 }
 0xcfe   :  { %732 = vperm.xlu1 %810, %v702_v24  }
 0xd06   :  { %705 = vperm.xlu1 %810, %v701_v57  }
 0xd70   :  { %v733_v58 = vpop.permute.xlu1 %732 }
 0xd71   :  { %v734_v59 = vperm.slane %v733_v58, %v1044_v10  ;;  %v763_v63 = vperm.slane %v733_v58, %v1071_v7 }
 0xd73   :  { %801 = vmatmul.msk.f32.vlgmr.msrb.gmra.mxu3 %vm278_vm3, %v734_v59 }
 0xd78   :  { %v706_v60 = vpop.permute.xlu1 %705 }
 0xd79   :  { %v707_v0 = vperm.slane %v706_v60, %v1044_v10  ;;  %v762_v1 = vperm.slane %v706_v60, %v1071_v7 }
 0xd7b   :  { %v764_v2 = vsel %vm229_vm1, %v763_v63, %v762_v1  ;;  %800 = vmatmul.msk.f32.vlgmr.msrb.gmra.mxu2 %vm278_vm3, %v707_v0 }
 0xdf6   :  { %v754_v3 = vpop.f32.mrf.mxu3 }
 0xdf7   :  { %v759_v40 = vrot.slane %v754_v3, 7 }
 0xdfe   :  { %v727_v5 = vpop.f32.mrf.mxu2 }
 0xdff   :  { %v760_v6 = vsel %vm229_vm1, %v759_v40, %v727_v5 }
 0xe00   :  { %v766_v11 = vsel %vm46_vm0, %v760_v6, %v764_v2 }
 0xe01   :  { %v767_v12 = vsel %vm339_vm4, %v766_v11, 0.0 }
 0xe02   :  { %802 = vst [vmem:[%s1161_s9 + $0x4] sm:$0x3] %v767_v12 }

</bundles_post_ra>
